<compile_context>
chip_gen: v7x
topology: tpu7x:2x2x1
jax: 0.10.0
libtpu: 0.0.40
codegen_flags: <defaults>
</compile_context>

<pallas_src>
import jax
import jax.numpy as jnp
from jax.experimental import pallas as pl
from jax.experimental.pallas import tpu as pltpu

EPS = 1e-5
DIMS = [100, 125, 175, 192]          # torch: Linear(100,125), (125,175), (175,192)
PAD = [128, 128, 256, 256]           # lane-padded feature dims (multiples of 128)


def _bn_train_fold(h, gamma, beta, inv_n):
    """BatchNorm1d, training-mode semantics (batch mean, biased variance),
    folded into a per-feature scale/shift. Variance uses the single-sweep
    E[h^2] - mean^2 form (f32 accumulation), so only one extra elementwise
    pass (h*h) over the (B, F) tile is needed for statistics."""
    s = jnp.sum(h, axis=0, keepdims=True)               # (1, F)
    ss = jnp.sum(h * h, axis=0, keepdims=True)           # (1, F)
    mean = s * inv_n
    var = ss * inv_n - mean * mean
    scale = gamma * jax.lax.rsqrt(var + EPS)              # EUP slot
    shift = beta - mean * scale
    return h * scale + shift


def fc_decoder_kernel(x_ref,
                      w1_ref, g1_ref, be1_ref,
                      w2_ref, g2_ref, be2_ref,
                      w3_ref, g3_ref, be3_ref,
                      o_ref):
    inv_n = jnp.float32(1.0) / jnp.float32(x_ref.shape[0])   # true batch size

    # layer 0: Linear (bias dropped; cancelled by train-mode BN) -> BN -> ReLU
    x = x_ref[...].astype(jnp.bfloat16)        # in-kernel f32->bf16 cast (tiny tile)
    h = jnp.dot(x, w1_ref[...], preferred_element_type=jnp.float32)
    h = jnp.maximum(_bn_train_fold(h, g1_ref[...], be1_ref[...], inv_n), 0.0)

    # layer 1: Linear -> BN -> ReLU
    h = jnp.dot(h.astype(jnp.bfloat16), w2_ref[...],
                preferred_element_type=jnp.float32)
    h = jnp.maximum(_bn_train_fold(h, g2_ref[...], be2_ref[...], inv_n), 0.0)

    # layer 2: Linear -> BN -> Tanh; only the real 192 features are written out
    h = jnp.dot(h.astype(jnp.bfloat16), w3_ref[...],
                preferred_element_type=jnp.float32)
    h = _bn_train_fold(h, g3_ref[...], be3_ref[...], inv_n)
    o_ref[...] = jnp.tanh(h[:, :o_ref.shape[1]])


def init_params(key):
    """Deterministic parameter init matching the torch module's shapes.

    nn.Linear(in,out): W (out,in), b (out,)  -- uniform(-1/sqrt(in), 1/sqrt(in))
    nn.BatchNorm1d(out): gamma = 1, beta = 0
    """
    params = []
    for i in range(3):
        key, kw, kb = jax.random.split(key, 3)
        fan_in, fan_out = DIMS[i], DIMS[i + 1]
        bound = 1.0 / (fan_in ** 0.5)
        W = jax.random.uniform(kw, (fan_out, fan_in), jnp.float32, -bound, bound)
        b = jax.random.uniform(kb, (fan_out,), jnp.float32, -bound, bound)
        gamma = jnp.ones((fan_out,), jnp.float32)
        beta = jnp.zeros((fan_out,), jnp.float32)
        params.append((W, b, gamma, beta))
    return params


def prepare_params(params):
    """ONE-TIME preprocessing (hoisted out of the forward path):
    transpose weights to (in, out), zero-pad to lane-aligned dims, cast
    weights to bf16 (gamma / beta stay f32).

    The Linear bias is intentionally DROPPED: under training-mode BN,
    (h + b) - mean(h + b) == h - mean(h), so the bias has no effect on the
    output and omitting it removes 3 full-(B,F) adds and 3 operand DMAs.

    NOTE: gamma/beta MUST stay zero in the padded lanes — that keeps padded
    features exactly 0 through BN (var=0 -> rsqrt(eps) is large, but it is
    multiplied by gamma=0). Do not pad them with ones.
    """
    flat = []
    for i, (W, _b, gamma, beta) in enumerate(params):
        in_p, out_p = PAD[i], PAD[i + 1]
        pad_in, pad_out = in_p - DIMS[i], out_p - DIMS[i + 1]
        Wt = jnp.pad(W.T, ((0, pad_in), (0, pad_out))).astype(jnp.bfloat16)
        gp = jnp.pad(gamma, (0, pad_out))[None, :].astype(jnp.float32)
        bep = jnp.pad(beta, (0, pad_out))[None, :].astype(jnp.float32)
        flat += [Wt, gp, bep]
    return tuple(flat)


@jax.jit
def fc_decoder_forward(x, padded_params):
    """x: (B, 100, 1) float32 -> (B, 192, 1) float32 (matches torch forward).
    padded_params: output of prepare_params()."""
    B = x.shape[0]
    x2d = jnp.reshape(x, (B, DIMS[0]))                    # squeeze(-1): metadata only
    x_pad = jnp.pad(x2d, ((0, 0), (0, PAD[0] - DIMS[0]))) # single wrapper pad, stays f32

    operands = (x_pad,) + tuple(padded_params)
    full_block = lambda arr: pl.BlockSpec(arr.shape, lambda i: (0, 0))

    out = pl.pallas_call(
        fc_decoder_kernel,
        out_shape=jax.ShapeDtypeStruct((B, DIMS[3]), jnp.float32),  # (B,192) directly
        grid=(1,),
        in_specs=[full_block(a) for a in operands],
        out_specs=pl.BlockSpec((B, DIMS[3]), lambda i: (0, 0)),
        compiler_params=pltpu.CompilerParams(
            dimension_semantics=("arbitrary",)),
    )(*operands)

    return out[..., None]                                 # (B, 192, 1) — free reshape


def _reference_forward(x, params):
    """Pure-JAX f32 reference of the torch forward (training-mode BN, with bias)."""
    h = jnp.squeeze(x, axis=-1)
    for i, (W, b, gamma, beta) in enumerate(params):
        h = h @ W.T + b
        mean = jnp.mean(h, axis=0, keepdims=True)
        var = jnp.mean((h - mean) ** 2, axis=0, keepdims=True)
        h = gamma * (h - mean) / jnp.sqrt(var + EPS) + beta
        h = jnp.maximum(h, 0.0) if i != 2 else jnp.tanh(h)
    return h[..., None]


if __name__ == "__main__":
    key = jax.random.PRNGKey(0)
    kx, kp = jax.random.split(key)

    B = 8
    x = jax.random.normal(kx, (B, DIMS[0], 1), dtype=jnp.float32)   # (8, 100, 1)
    params = init_params(kp)
    padded_params = prepare_params(params)      # hoisted: done once, not per call

    out = fc_decoder_forward(x, padded_params)
    out = jax.block_until_ready(out)

    ref = _reference_forward(x, params)
    assert out.shape == (B, DIMS[3], 1), out.shape
    # bf16 weights/activation operands -> looser tolerance vs. the f32 reference
    max_err = float(jnp.max(jnp.abs(out - ref)))
    assert max_err < 1e-1, max_err

    print("KERNEL_OK")
</pallas_src>

<mosaic_0001>
module attributes {stable_mosaic.version = 11 : i64} {
  func.func @fc_decoder_kernel(%arg0: i32, %arg1: memref<8x128xf32, #tpu.memory_space<vmem>>, %arg2: memref<128x128xbf16, #tpu.memory_space<vmem>>, %arg3: memref<1x128xf32, #tpu.memory_space<vmem>>, %arg4: memref<1x128xf32, #tpu.memory_space<vmem>>, %arg5: memref<128x256xbf16, #tpu.memory_space<vmem>>, %arg6: memref<1x256xf32, #tpu.memory_space<vmem>>, %arg7: memref<1x256xf32, #tpu.memory_space<vmem>>, %arg8: memref<256x256xbf16, #tpu.memory_space<vmem>>, %arg9: memref<1x256xf32, #tpu.memory_space<vmem>>, %arg10: memref<1x256xf32, #tpu.memory_space<vmem>>, %arg11: memref<8x192xf32, #tpu.memory_space<vmem>>) attributes {dimension_semantics = [#tpu.dimension_semantics<arbitrary>], iteration_bounds = array<i64: 1>, scalar_prefetch = 0 : i64, scratch_operands = 0 : i64, tpu.core_type = #tpu.core_type<tc>, window_params = [{pipeline_mode = #tpu.pipeline_mode<synchronous>, transform_indices = @transform_0, window_bounds = array<i64: 8, 128>}, {pipeline_mode = #tpu.pipeline_mode<synchronous>, transform_indices = @transform_1, window_bounds = array<i64: 128, 128>}, {pipeline_mode = #tpu.pipeline_mode<synchronous>, transform_indices = @transform_2, window_bounds = array<i64: 1, 128>}, {pipeline_mode = #tpu.pipeline_mode<synchronous>, transform_indices = @transform_3, window_bounds = array<i64: 1, 128>}, {pipeline_mode = #tpu.pipeline_mode<synchronous>, transform_indices = @transform_4, window_bounds = array<i64: 128, 256>}, {pipeline_mode = #tpu.pipeline_mode<synchronous>, transform_indices = @transform_5, window_bounds = array<i64: 1, 256>}, {pipeline_mode = #tpu.pipeline_mode<synchronous>, transform_indices = @transform_6, window_bounds = array<i64: 1, 256>}, {pipeline_mode = #tpu.pipeline_mode<synchronous>, transform_indices = @transform_7, window_bounds = array<i64: 256, 256>}, {pipeline_mode = #tpu.pipeline_mode<synchronous>, transform_indices = @transform_8, window_bounds = array<i64: 1, 256>}, {pipeline_mode = #tpu.pipeline_mode<synchronous>, transform_indices = @transform_9, window_bounds = array<i64: 1, 256>}, {pipeline_mode = #tpu.pipeline_mode<synchronous>, transform_indices = @transform_10, window_bounds = array<i64: 8, 192>}]} {
    %cst = arith.constant 1.000000e+00 : f32
    %cst_0 = arith.constant 8.000000e+00 : f32
    %0 = arith.divf %cst, %cst_0 : f32
    %c0 = arith.constant 0 : index
    %c0_1 = arith.constant 0 : index
    %1 = vector.load %arg1[%c0, %c0_1] : memref<8x128xf32, #tpu.memory_space<vmem>>, vector<8x128xf32>
    %2 = arith.truncf %1 : vector<8x128xf32> to vector<8x128xbf16>
    %c0_2 = arith.constant 0 : index
    %c0_3 = arith.constant 0 : index
    %3 = vector.load %arg2[%c0_2, %c0_3] : memref<128x128xbf16, #tpu.memory_space<vmem>>, vector<128x128xbf16>
    %cst_4 = arith.constant dense<0.000000e+00> : vector<8x128xf32>
    %4 = tpu.matmul %2, %3, %cst_4 {dimension_numbers = #tpu.dot_dimension_numbers<[1], [0], [0], [1], [0, 0, 1, 1], [], []>} : vector<8x128xbf16>, vector<128x128xbf16>, vector<8x128xf32> -> vector<8x128xf32>
    %c0_5 = arith.constant 0 : index
    %c0_6 = arith.constant 0 : index
    %5 = vector.load %arg3[%c0_5, %c0_6] : memref<1x128xf32, #tpu.memory_space<vmem>>, vector<1x128xf32>
    %c0_7 = arith.constant 0 : index
    %c0_8 = arith.constant 0 : index
    %6 = vector.load %arg4[%c0_7, %c0_8] : memref<1x128xf32, #tpu.memory_space<vmem>>, vector<1x128xf32>
    %cst_9 = arith.constant dense<0.000000e+00> : vector<128xf32>
    %7 = vector.multi_reduction <add>, %4, %cst_9 [0] : vector<8x128xf32> to vector<128xf32>
    %8 = vector.shape_cast %7 : vector<128xf32> to vector<1x128xf32>
    %9 = arith.mulf %4, %4 : vector<8x128xf32>
    %cst_10 = arith.constant dense<0.000000e+00> : vector<128xf32>
    %10 = vector.multi_reduction <add>, %9, %cst_10 [0] : vector<8x128xf32> to vector<128xf32>
    %11 = vector.shape_cast %10 : vector<128xf32> to vector<1x128xf32>
    %12 = vector.broadcast %0 : f32 to vector<1x128xf32>
    %13 = arith.mulf %8, %12 : vector<1x128xf32>
    %14 = vector.broadcast %0 : f32 to vector<1x128xf32>
    %15 = arith.mulf %11, %14 : vector<1x128xf32>
    %16 = arith.mulf %13, %13 : vector<1x128xf32>
    %17 = arith.subf %15, %16 : vector<1x128xf32>
    %cst_11 = arith.constant 9.99999974E-6 : f32
    %18 = vector.broadcast %cst_11 : f32 to vector<1x128xf32>
    %19 = arith.addf %17, %18 : vector<1x128xf32>
    %20 = math.rsqrt %19 : vector<1x128xf32>
    %21 = arith.mulf %5, %20 : vector<1x128xf32>
    %22 = arith.mulf %13, %21 : vector<1x128xf32>
    %23 = arith.subf %6, %22 : vector<1x128xf32>
    %24 = vector.broadcast %21 : vector<1x128xf32> to vector<8x128xf32>
    %25 = arith.mulf %4, %24 : vector<8x128xf32>
    %26 = vector.broadcast %23 : vector<1x128xf32> to vector<8x128xf32>
    %27 = arith.addf %25, %26 : vector<8x128xf32>
    %cst_12 = arith.constant 0.000000e+00 : f32
    %28 = vector.broadcast %cst_12 : f32 to vector<8x128xf32>
    %29 = arith.maximumf %27, %28 : vector<8x128xf32>
    %30 = arith.truncf %29 : vector<8x128xf32> to vector<8x128xbf16>
    %c0_13 = arith.constant 0 : index
    %c0_14 = arith.constant 0 : index
    %31 = vector.load %arg5[%c0_13, %c0_14] : memref<128x256xbf16, #tpu.memory_space<vmem>>, vector<128x256xbf16>
    %cst_15 = arith.constant dense<0.000000e+00> : vector<8x256xf32>
    %32 = tpu.matmul %30, %31, %cst_15 {dimension_numbers = #tpu.dot_dimension_numbers<[1], [0], [0], [1], [0, 0, 1, 1], [], []>} : vector<8x128xbf16>, vector<128x256xbf16>, vector<8x256xf32> -> vector<8x256xf32>
    %c0_16 = arith.constant 0 : index
    %c0_17 = arith.constant 0 : index
    %33 = vector.load %arg6[%c0_16, %c0_17] : memref<1x256xf32, #tpu.memory_space<vmem>>, vector<1x256xf32>
    %c0_18 = arith.constant 0 : index
    %c0_19 = arith.constant 0 : index
    %34 = vector.load %arg7[%c0_18, %c0_19] : memref<1x256xf32, #tpu.memory_space<vmem>>, vector<1x256xf32>
    %cst_20 = arith.constant dense<0.000000e+00> : vector<256xf32>
    %35 = vector.multi_reduction <add>, %32, %cst_20 [0] : vector<8x256xf32> to vector<256xf32>
    %36 = vector.shape_cast %35 : vector<256xf32> to vector<1x256xf32>
    %37 = arith.mulf %32, %32 : vector<8x256xf32>
    %cst_21 = arith.constant dense<0.000000e+00> : vector<256xf32>
    %38 = vector.multi_reduction <add>, %37, %cst_21 [0] : vector<8x256xf32> to vector<256xf32>
    %39 = vector.shape_cast %38 : vector<256xf32> to vector<1x256xf32>
    %40 = vector.broadcast %0 : f32 to vector<1x256xf32>
    %41 = arith.mulf %36, %40 : vector<1x256xf32>
    %42 = vector.broadcast %0 : f32 to vector<1x256xf32>
    %43 = arith.mulf %39, %42 : vector<1x256xf32>
    %44 = arith.mulf %41, %41 : vector<1x256xf32>
    %45 = arith.subf %43, %44 : vector<1x256xf32>
    %cst_22 = arith.constant 9.99999974E-6 : f32
    %46 = vector.broadcast %cst_22 : f32 to vector<1x256xf32>
    %47 = arith.addf %45, %46 : vector<1x256xf32>
    %48 = math.rsqrt %47 : vector<1x256xf32>
    %49 = arith.mulf %33, %48 : vector<1x256xf32>
    %50 = arith.mulf %41, %49 : vector<1x256xf32>
    %51 = arith.subf %34, %50 : vector<1x256xf32>
    %52 = vector.broadcast %49 : vector<1x256xf32> to vector<8x256xf32>
    %53 = arith.mulf %32, %52 : vector<8x256xf32>
    %54 = vector.broadcast %51 : vector<1x256xf32> to vector<8x256xf32>
    %55 = arith.addf %53, %54 : vector<8x256xf32>
    %cst_23 = arith.constant 0.000000e+00 : f32
    %56 = vector.broadcast %cst_23 : f32 to vector<8x256xf32>
    %57 = arith.maximumf %55, %56 : vector<8x256xf32>
    %58 = arith.truncf %57 : vector<8x256xf32> to vector<8x256xbf16>
    %c0_24 = arith.constant 0 : index
    %c0_25 = arith.constant 0 : index
    %59 = vector.load %arg8[%c0_24, %c0_25] : memref<256x256xbf16, #tpu.memory_space<vmem>>, vector<256x256xbf16>
    %cst_26 = arith.constant dense<0.000000e+00> : vector<8x256xf32>
    %60 = tpu.matmul %58, %59, %cst_26 {dimension_numbers = #tpu.dot_dimension_numbers<[1], [0], [0], [1], [0, 0, 1, 1], [], []>} : vector<8x256xbf16>, vector<256x256xbf16>, vector<8x256xf32> -> vector<8x256xf32>
    %c0_27 = arith.constant 0 : index
    %c0_28 = arith.constant 0 : index
    %61 = vector.load %arg9[%c0_27, %c0_28] : memref<1x256xf32, #tpu.memory_space<vmem>>, vector<1x256xf32>
    %c0_29 = arith.constant 0 : index
    %c0_30 = arith.constant 0 : index
    %62 = vector.load %arg10[%c0_29, %c0_30] : memref<1x256xf32, #tpu.memory_space<vmem>>, vector<1x256xf32>
    %cst_31 = arith.constant dense<0.000000e+00> : vector<256xf32>
    %63 = vector.multi_reduction <add>, %60, %cst_31 [0] : vector<8x256xf32> to vector<256xf32>
    %64 = vector.shape_cast %63 : vector<256xf32> to vector<1x256xf32>
    %65 = arith.mulf %60, %60 : vector<8x256xf32>
    %cst_32 = arith.constant dense<0.000000e+00> : vector<256xf32>
    %66 = vector.multi_reduction <add>, %65, %cst_32 [0] : vector<8x256xf32> to vector<256xf32>
    %67 = vector.shape_cast %66 : vector<256xf32> to vector<1x256xf32>
    %68 = vector.broadcast %0 : f32 to vector<1x256xf32>
    %69 = arith.mulf %64, %68 : vector<1x256xf32>
    %70 = vector.broadcast %0 : f32 to vector<1x256xf32>
    %71 = arith.mulf %67, %70 : vector<1x256xf32>
    %72 = arith.mulf %69, %69 : vector<1x256xf32>
    %73 = arith.subf %71, %72 : vector<1x256xf32>
    %cst_33 = arith.constant 9.99999974E-6 : f32
    %74 = vector.broadcast %cst_33 : f32 to vector<1x256xf32>
    %75 = arith.addf %73, %74 : vector<1x256xf32>
    %76 = math.rsqrt %75 : vector<1x256xf32>
    %77 = arith.mulf %61, %76 : vector<1x256xf32>
    %78 = arith.mulf %69, %77 : vector<1x256xf32>
    %79 = arith.subf %62, %78 : vector<1x256xf32>
    %80 = vector.broadcast %77 : vector<1x256xf32> to vector<8x256xf32>
    %81 = arith.mulf %60, %80 : vector<8x256xf32>
    %82 = vector.broadcast %79 : vector<1x256xf32> to vector<8x256xf32>
    %83 = arith.addf %81, %82 : vector<8x256xf32>
    %84 = vector.extract_strided_slice %83 {offsets = [0, 0], sizes = [8, 192], strides = [1, 1]} : vector<8x256xf32> to vector<8x192xf32>
    %85 = math.tanh %84 : vector<8x192xf32>
    %c0_34 = arith.constant 0 : index
    %c0_35 = arith.constant 0 : index
    %86 = vector.load %arg11[%c0_34, %c0_35] : memref<8x192xf32, #tpu.memory_space<vmem>>, vector<8x192xf32>
    tpu.vector_store %arg11[%c0_34, %c0_35], %85 {strides = array<i32>} : memref<8x192xf32, #tpu.memory_space<vmem>>, vector<8x192xf32>,
    return
  }
  func.func @transform_0(%arg0: i32) -> (i32, i32) {
    %c0_i32 = arith.constant 0 : i32
    %c0_i32_0 = arith.constant 0 : i32
    %c0_i32_1 = arith.constant 0 : i32
    return %c0_i32, %c0_i32_0 : i32, i32
  }
  func.func @transform_1(%arg0: i32) -> (i32, i32) {
    %c0_i32 = arith.constant 0 : i32
    %c0_i32_0 = arith.constant 0 : i32
    %c0_i32_1 = arith.constant 0 : i32
    return %c0_i32, %c0_i32_0 : i32, i32
  }
  func.func @transform_2(%arg0: i32) -> (i32, i32) {
    %c0_i32 = arith.constant 0 : i32
    %c0_i32_0 = arith.constant 0 : i32
    %c0_i32_1 = arith.constant 0 : i32
    return %c0_i32, %c0_i32_0 : i32, i32
  }
  func.func @transform_3(%arg0: i32) -> (i32, i32) {
    %c0_i32 = arith.constant 0 : i32
    %c0_i32_0 = arith.constant 0 : i32
    %c0_i32_1 = arith.constant 0 : i32
    return %c0_i32, %c0_i32_0 : i32, i32
  }
  func.func @transform_4(%arg0: i32) -> (i32, i32) {
    %c0_i32 = arith.constant 0 : i32
    %c0_i32_0 = arith.constant 0 : i32
    %c0_i32_1 = arith.constant 0 : i32
    return %c0_i32, %c0_i32_0 : i32, i32
  }
  func.func @transform_5(%arg0: i32) -> (i32, i32) {
    %c0_i32 = arith.constant 0 : i32
    %c0_i32_0 = arith.constant 0 : i32
    %c0_i32_1 = arith.constant 0 : i32
    return %c0_i32, %c0_i32_0 : i32, i32
  }
  func.func @transform_6(%arg0: i32) -> (i32, i32) {
    %c0_i32 = arith.constant 0 : i32
    %c0_i32_0 = arith.constant 0 : i32
    %c0_i32_1 = arith.constant 0 : i32
    return %c0_i32, %c0_i32_0 : i32, i32
  }
  func.func @transform_7(%arg0: i32) -> (i32, i32) {
    %c0_i32 = arith.constant 0 : i32
    %c0_i32_0 = arith.constant 0 : i32
    %c0_i32_1 = arith.constant 0 : i32
    return %c0_i32, %c0_i32_0 : i32, i32
  }
  func.func @transform_8(%arg0: i32) -> (i32, i32) {
    %c0_i32 = arith.constant 0 : i32
    %c0_i32_0 = arith.constant 0 : i32
    %c0_i32_1 = arith.constant 0 : i32
    return %c0_i32, %c0_i32_0 : i32, i32
  }
  func.func @transform_9(%arg0: i32) -> (i32, i32) {
    %c0_i32 = arith.constant 0 : i32
    %c0_i32_0 = arith.constant 0 : i32
    %c0_i32_1 = arith.constant 0 : i32
    return %c0_i32, %c0_i32_0 : i32, i32
  }
  func.func @transform_10(%arg0: i32) -> (i32, i32) {
    %c0_i32 = arith.constant 0 : i32
    %c0_i32_0 = arith.constant 0 : i32
    %c0_i32_1 = arith.constant 0 : i32
    return %c0_i32, %c0_i32_0 : i32, i32
  }
}

</mosaic_0001>

<bundles_post_ra>
// kernel: fc_decoder_forward.1
= control target key start
LH: loop header
LB: loop body
LE: loop exit
PB: predicated region body
PF: predicated region fallthrough
CT: control target
= control target key end

     0   :  { %15 = vsyncpa [#allocation3], 0  ;;  %s1244_s0 = inlined_call_operand.vmem [shape: f32[8,128], index: 0, kind: input, shape index: {}]   ;;  %s1245_s1 = inlined_call_operand.hbm [shape: bf16[128,128], index: 1, kind: input, shape index: {}]   ;;  %s1246_s2 = inlined_call_operand.vmem [shape: f32[1,128], index: 2, kind: input, shape index: {}]   ;;  %s1247_s3 = inlined_call_operand.vmem [shape: f32[1,128], index: 3, kind: input, shape index: {}]   ;;  %s1248_s4 = inlined_call_operand.hbm [shape: bf16[128,256], index: 4, kind: input, shape index: {}]   ;;  %s1249_s5 = inlined_call_operand.vmem [shape: f32[1,256], index: 5, kind: input, shape index: {}]   ;;  %s1250_s6 = inlined_call_operand.vmem [shape: f32[1,256], index: 6, kind: input, shape index: {}]   ;;  %s1251_s7 = inlined_call_operand.hbm [shape: bf16[256,256], index: 7, kind: input, shape index: {}]   ;;  %s1252_s8 = inlined_call_operand.vmem [shape: f32[1,256], index: 8, kind: input, shape index: {}]   ;;  %s1253_s9 = inlined_call_operand.vmem [shape: f32[1,256], index: 9, kind: input, shape index: {}]   ;;  %s1254_s10 = inlined_call_operand.vmem [shape: f32[8,192], index: 10, kind: output, shape index: {}]  }
   0x1   :  { %16 = vsyncpa [#allocation5], 0  ;;  %s1080_s13 = smov [#allocation4]   ;;  %s1010_s17 = scalar_lea.hbm %s1248_s4, 2048 }
   0x2   :  { %s40_s14 = sshll.u32 %s1080_s13, 4  ;;  %p1011_p0 = scmp.ne.s32.totalorder %s1248_s4, %s1010_s17  ;;  %s41_s14 = int_to_ptr.vmem [resolvable:$true] %s40_s14 }
   0x3   :  { %p1014_p1 = scmp.lt.u32.totalorder %s1010_s17, %s1248_s4 }
   0x5   :  { %p1016_p2 = pnand %p1014_p1, %p1011_p0 }
   0x7   :  { %1019 = shalt.err (!%p1016_p2)
}
   0x8   :  { %s1020_s22 = scalar_lea.vmem %s41_s14, 2048  ;;  %p1025_p4 = scmp.lt.s32.totalorder %s41_s14, %s41_s14 }
   0x9   :  { %p1021_p3 = scmp.ne.s32.totalorder %s41_s14, %s1020_s22  ;;  %p1026_p5 = scmp.lt.s32.totalorder %s1020_s22, %s1020_s22 }
   0xb   :  { %p1027_p6 = por %p1026_p5, %p1025_p4 }
   0xd   :  { %p1028_p7 = pnand %p1027_p6, %p1021_p3 }
   0xf   :  { %1031 = shalt.err (!%p1028_p7)
}
  0x10   :  { %s1081_s23 = smov 128   ;;  %s1082_s24 = smov 8  }
  0x11   :  { %46 = dma.hbm_to_vmem [thread:$0]  %s1248_s4, 2048, %s41_s14, [#allocation5], %s1081_s23, %s1081_s23, %s1082_s24  }
  0x12   :  { %s1083_s27 = smov [#allocation2]   ;;  %s1032_s11 = scalar_lea.hbm %s1245_s1, 1024 }
  0x13   :  { %s24_s28 = sshll.u32 %s1083_s27, 4  ;;  %p1033_p8 = scmp.ne.s32.totalorder %s1245_s1, %s1032_s11  ;;  %s25_s28 = int_to_ptr.vmem [resolvable:$true] %s24_s28 }
  0x14   :  { %p1036_p9 = scmp.lt.u32.totalorder %s1032_s11, %s1245_s1 }
  0x16   :  { %p1038_p10 = pnand %p1036_p9, %p1033_p8 }
  0x18   :  { %1041 = shalt.err (!%p1038_p10)
}
  0x19   :  { %s1042_s17 = scalar_lea.vmem %s25_s28, 1024  ;;  %p1047_p12 = scmp.lt.s32.totalorder %s25_s28, %s25_s28 }
  0x1a   :  { %p1043_p11 = scmp.ne.s32.totalorder %s25_s28, %s1042_s17  ;;  %p1048_p13 = scmp.lt.s32.totalorder %s1042_s17, %s1042_s17 }
  0x1c   :  { %p1049_p0 = por %p1048_p13, %p1047_p12 }
  0x1e   :  { %p1050_p1 = pnand %p1049_p0, %p1043_p11 }
  0x20   :  { %1053 = shalt.err (!%p1050_p1)
}
  0x21   :  { %s1084_s4 = smov 64   ;;  %s1085_s14 = smov 4  }
  0x22   :  { %30 = dma.hbm_to_vmem [thread:$0]  %s1245_s1, 1024, %s25_s28, [#allocation3], %s1084_s4, %s1084_s4, %s1085_s14  }
  0x23   :  { %s1086_s20 = smov [#allocation6]   ;;  %s1054_s26 = scalar_lea.hbm %s1251_s7, 4096 }
  0x24   :  { %s56_s21 = sshll.u32 %s1086_s20, 4  ;;  %p1055_p2 = scmp.ne.s32.totalorder %s1251_s7, %s1054_s26  ;;  %s57_s21 = int_to_ptr.vmem [resolvable:$true] %s56_s21 }
  0x25   :  { %p1058_p3 = scmp.lt.u32.totalorder %s1054_s26, %s1251_s7 }
  0x27   :  { %p1060_p4 = pnand %p1058_p3, %p1055_p2 }
  0x29   :  { %1063 = shalt.err (!%p1060_p4)
}
  0x2a   :  { %s1064_s12 = scalar_lea.vmem %s57_s21, 4096  ;;  %p1069_p6 = scmp.lt.s32.totalorder %s57_s21, %s57_s21 }
  0x2b   :  { %p1065_p5 = scmp.ne.s32.totalorder %s57_s21, %s1064_s12  ;;  %p1070_p7 = scmp.lt.s32.totalorder %s1064_s12, %s1064_s12 }
  0x2d   :  { %p1071_p8 = por %p1070_p7, %p1069_p6 }
  0x2f   :  { %p1072_p9 = pnand %p1071_p8, %p1065_p5 }
  0x31   :  { %1075 = shalt.err (!%p1072_p9)
}
  0x32   :  { %62 = dma.hbm_to_vmem [thread:$0]  %s1251_s7, 4096, %s57_s21, [#allocation5], %s1081_s23, %s1081_s23, %s1082_s24  }
  0x33   :  { %1076 = dma.done.wait [#allocation3], 1024  }
  0x34   :  { %1077 = vsyncadd [#allocation3], 4294966272 }
  0x35   :  { %1078 = dma.done.wait [#allocation5], 6144  }
  0x36   :  { %1079 = vsyncadd [#allocation5], 4294961152  ;;  %v1087_v0 = vmov 0.0   ;;  %vm1088_vm0 = vmmov 0   ;;  %v916_v1 = vld [vmem:[#allocation2] sm:$0xff]   ;;  %v917_v2 = vld [vmem:[#allocation2 + $0x8] sm:$0xff]   ;;  %v208_v52 = vlaneseq }
  0x37   :  { %885 = vmatprep.subr.bf16.mxu1 %v1087_v0  ;;  %901 = vmatprep.mubr.msk.bf16.mxu1 %vm1088_vm0, %v1087_v0  ;;  %v918_v3 = vld [vmem:[#allocation2 + $0x10] sm:$0xff]   ;;  %v919_v4 = vld [vmem:[#allocation2 + $0x18] sm:$0xff]   ;;  %v920_v5 = vld [vmem:[#allocation2 + $0x20] sm:$0xff]   ;;  %v1089_v27 = vmov 0   ;;  %vm812_vm1 = vcmask 523264  }
  0x38   :  { %886 = vmatpush3.bf16.msra.mxu1 %v916_v1  ;;  %v921_v6 = vld [vmem:[#allocation2 + $0x28] sm:$0xff]   ;;  %v922_v7 = vld [vmem:[#allocation2 + $0x30] sm:$0xff]   ;;  %v923_v8 = vld [vmem:[#allocation2 + $0x38] sm:$0xff]   ;;  %v1191_v53 = vshrl.u32 %v208_v52, 7 }
  0x39   :  { %887 = vmatprep.subr.bf16.mxu1 %v1087_v0  ;;  %v77_v9 = vld [vmem:[%s1244_s0] sm:$0xff]  ;;  %v929_v13 = vld [vmem:[#allocation4 + $0x14] ss:$8 sps:$4 sm:$0xff]   ;;  %v927_v14 = vld [vmem:[#allocation4 + $0x10] ss:$8 sps:$4 sm:$0xff]  }
  0x3a   :  { %v78_v10 = vpack.c.bf16 %v77_v9, %v77_v9  ;;  %v926_v11 = vld [vmem:[#allocation4 + $0x4] ss:$8 sps:$4 sm:$0xff]   ;;  %v924_v12 = vld [vmem:[#allocation4] ss:$8 sps:$4 sm:$0xff]   ;;  %v935_v17 = vld [vmem:[#allocation4 + $0x34] ss:$8 sps:$4 sm:$0xff]  }
  0x3b   :  { %v932_v15 = vld [vmem:[#allocation4 + $0x24] ss:$8 sps:$4 sm:$0xff]   ;;  %v930_v16 = vld [vmem:[#allocation4 + $0x20] ss:$8 sps:$4 sm:$0xff]   ;;  %v933_v18 = vld [vmem:[#allocation4 + $0x30] ss:$8 sps:$4 sm:$0xff]  }
  0x3c   :  { %888 = vmatpush3.bf16.msra.mxu1 %v917_v2  ;;  %v938_v19 = vld [vmem:[#allocation4 + $0x44] ss:$8 sps:$4 sm:$0xff]   ;;  %v936_v20 = vld [vmem:[#allocation4 + $0x40] ss:$8 sps:$4 sm:$0xff]   ;;  %v941_v21 = vld [vmem:[#allocation4 + $0x54] ss:$8 sps:$4 sm:$0xff]  }
  0x3d   :  { %889 = vmatprep.subr.bf16.mxu1 %v1087_v0  ;;  %v939_v22 = vld [vmem:[#allocation4 + $0x50] ss:$8 sps:$4 sm:$0xff]   ;;  %v944_v23 = vld [vmem:[#allocation4 + $0x64] ss:$8 sps:$4 sm:$0xff]   ;;  %v942_v24 = vld [vmem:[#allocation4 + $0x60] ss:$8 sps:$4 sm:$0xff]  }
  0x3e   :  { %v945_v25 = vld [vmem:[#allocation4 + $0x70] ss:$8 sps:$4 sm:$0xff]   ;;  %v947_v26 = vld [vmem:[#allocation4 + $0x74] ss:$8 sps:$4 sm:$0xff]   ;;  %v948_v28 = vld [vmem:[#allocation6 + $0x4] ss:$8 sps:$4 sm:$0xff]  }
  0x3f   :  { %v950_v29 = vld [vmem:[#allocation6] ss:$8 sps:$4 sm:$0xff]   ;;  %662 = vmatprep.subr.bf16.mxu0 %v948_v28  ;;  %v1197_v55 = vsub.s32 0, %v1191_v53  ;;  %v960_v9 = vld [vmem:[#allocation6 + $0x44] ss:$8 sps:$4 sm:$0xff]  }
  0x40   :  { %890 = vmatpush3.bf16.msra.mxu1 %v918_v3  ;;  %663 = vmatpush1.bf16.msra.mxu0 %v950_v29  ;;  %v183_v54 = vld [vmem:[%s1246_s2] sm:$0x1]  ;;  %v951_v3 = vld [vmem:[#allocation6 + $0x14] ss:$8 sps:$4 sm:$0xff]   ;;  %v989_v28 = vld [vmem:[#allocation6 + $0xd0] ss:$8 sps:$4 sm:$0xff]  }
  0x41   :  { %891 = vmatprep.subr.bf16.mxu1 %v1087_v0  ;;  %v184_v58 = vld [vmem:[%s1247_s3] sm:$0x1]  ;;  %664 = vmatprep.subr.bf16.mxu0 %v951_v3  ;;  %v990_v29 = vld [vmem:[#allocation6 + $0xe4] ss:$8 sps:$4 sm:$0xff]  }
  0x44   :  { %892 = vmatpush3.bf16.msra.mxu1 %v919_v4  ;;  %v953_v4 = vld [vmem:[#allocation6 + $0x10] ss:$8 sps:$4 sm:$0xff]  }
  0x45   :  { %893 = vmatprep.subr.bf16.mxu1 %v1087_v0  ;;  %665 = vmatpush1.bf16.msra.mxu0 %v953_v4 }
  0x48   :  { %894 = vmatpush3.bf16.msra.mxu1 %v920_v5  ;;  %v954_v5 = vld [vmem:[#allocation6 + $0x24] ss:$8 sps:$4 sm:$0xff]  }
  0x49   :  { %895 = vmatprep.subr.bf16.mxu1 %v1087_v0  ;;  %666 = vmatprep.subr.bf16.mxu0 %v954_v5 }
  0x4c   :  { %896 = vmatpush3.bf16.msra.mxu1 %v921_v6  ;;  %v956_v6 = vld [vmem:[#allocation6 + $0x20] ss:$8 sps:$4 sm:$0xff]  }
  0x4d   :  { %897 = vmatprep.subr.bf16.mxu1 %v1087_v0  ;;  %667 = vmatpush1.bf16.msra.mxu0 %v956_v6 }
  0x50   :  { %898 = vmatpush3.bf16.msra.mxu1 %v922_v7  ;;  %v957_v7 = vld [vmem:[#allocation6 + $0x34] ss:$8 sps:$4 sm:$0xff]  }
  0x51   :  { %899 = vmatprep.subr.bf16.mxu1 %v1087_v0  ;;  %668 = vmatprep.subr.bf16.mxu0 %v957_v7 }
  0x54   :  { %900 = vmatpush3.bf16.msra.mxu1 %v923_v8  ;;  %v959_v8 = vld [vmem:[#allocation6 + $0x30] ss:$8 sps:$4 sm:$0xff]  }
  0x55   :  { %319 = vmatprep.subr.bf16.mxu1 %v926_v11  ;;  %669 = vmatpush1.bf16.msra.mxu0 %v959_v8  ;;  %v963_v11 = vld [vmem:[#allocation6 + $0x54] ss:$8 sps:$4 sm:$0xff]  }
  0x56   :  { %670 = vmatprep.subr.bf16.mxu0 %v960_v9 }
  0x57   :  { %902 = vmatmul.mubr.bf16.vlgmr.msra.gmra.mrb[0].mxu1 %v78_v10  ;;  %v962_v10 = vld [vmem:[#allocation6 + $0x40] ss:$8 sps:$4 sm:$0xff]  }
  0x58   :  { %320 = vmatpush1.bf16.msra.mxu1 %v924_v12  ;;  %351 = vmatprep.mubr.bf16.mxu1 %v1089_v27  ;;  %v965_v12 = vld [vmem:[#allocation6 + $0x50] ss:$8 sps:$4 sm:$0xff]   ;;  %v987_v27 = vld [vmem:[#allocation6 + $0xd4] ss:$8 sps:$4 sm:$0xff]  }
  0x59   :  { %321 = vmatprep.subr.bf16.mxu1 %v929_v13  ;;  %671 = vmatpush1.bf16.msra.mxu0 %v962_v10  ;;  %v966_v13 = vld [vmem:[#allocation6 + $0x64] ss:$8 sps:$4 sm:$0xff]  }
  0x5a   :  { %672 = vmatprep.subr.bf16.mxu0 %v963_v11  ;;  %v1090_v11 = vmov 1966171168  }
  0x5c   :  { %322 = vmatpush1.bf16.msra.mxu1 %v927_v14  ;;  %v968_v14 = vld [vmem:[#allocation6 + $0x60] ss:$8 sps:$4 sm:$0xff]  }
  0x5d   :  { %323 = vmatprep.subr.bf16.mxu1 %v932_v15  ;;  %673 = vmatpush1.bf16.msra.mxu0 %v965_v12  ;;  %v969_v15 = vld [vmem:[#allocation6 + $0x74] ss:$8 sps:$4 sm:$0xff]   ;;  %v404_v12 = vunpack.c.l.s4 %v1090_v11 }
  0x5e   :  { %674 = vmatprep.subr.bf16.mxu0 %v966_v13 }
  0x5f   :  { %v405_v13 = vunpack.c.0.s8 %v404_v12 }
  0x60   :  { %324 = vmatpush1.bf16.msra.mxu1 %v930_v16  ;;  %v971_v16 = vld [vmem:[#allocation6 + $0x70] ss:$8 sps:$4 sm:$0xff]  }
  0x61   :  { %325 = vmatprep.subr.bf16.mxu1 %v935_v17  ;;  %675 = vmatpush1.bf16.msra.mxu0 %v968_v14  ;;  %v972_v17 = vld [vmem:[#allocation6 + $0x84] ss:$8 sps:$4 sm:$0xff]  }
  0x62   :  { %676 = vmatprep.subr.bf16.mxu0 %v969_v15  ;;  %v1205_v15 = vsub.s32 %v405_v13, %v1191_v53 }
  0x64   :  { %326 = vmatpush1.bf16.msra.mxu1 %v933_v18  ;;  %v974_v18 = vld [vmem:[#allocation6 + $0x80] ss:$8 sps:$4 sm:$0xff]  }
  0x65   :  { %327 = vmatprep.subr.bf16.mxu1 %v938_v19  ;;  %677 = vmatpush1.bf16.msra.mxu0 %v971_v16  ;;  %v975_v19 = vld [vmem:[#allocation6 + $0x94] ss:$8 sps:$4 sm:$0xff]  }
  0x66   :  { %678 = vmatprep.subr.bf16.mxu0 %v972_v17 }
  0x68   :  { %328 = vmatpush1.bf16.msra.mxu1 %v936_v20  ;;  %v977_v20 = vld [vmem:[#allocation6 + $0x90] ss:$8 sps:$4 sm:$0xff]  }
  0x69   :  { %329 = vmatprep.subr.bf16.mxu1 %v941_v21  ;;  %679 = vmatpush1.bf16.msra.mxu0 %v974_v18  ;;  %v978_v21 = vld [vmem:[#allocation6 + $0xa4] ss:$8 sps:$4 sm:$0xff]  }
  0x6a   :  { %680 = vmatprep.subr.bf16.mxu0 %v975_v19  ;;  %v360_v19 = vld [vmem:[%s1249_s5] sm:$0x3] }
  0x6c   :  { %330 = vmatpush1.bf16.msra.mxu1 %v939_v22  ;;  %v980_v22 = vld [vmem:[#allocation6 + $0xa0] ss:$8 sps:$4 sm:$0xff]  }
  0x6d   :  { %331 = vmatprep.subr.bf16.mxu1 %v944_v23  ;;  %681 = vmatpush1.bf16.msra.mxu0 %v977_v20  ;;  %v981_v23 = vld [vmem:[#allocation6 + $0xb4] ss:$8 sps:$4 sm:$0xff]  }
  0x6e   :  { %682 = vmatprep.subr.bf16.mxu0 %v978_v21  ;;  %v1213_v21 = vsub.s32 1, %v1191_v53 }
  0x70   :  { %332 = vmatpush1.bf16.msra.mxu1 %v942_v24  ;;  %v983_v24 = vld [vmem:[#allocation6 + $0xb0] ss:$8 sps:$4 sm:$0xff]  }
  0x71   :  { %333 = vmatprep.subr.bf16.mxu1 %v947_v26  ;;  %683 = vmatpush1.bf16.msra.mxu0 %v980_v22  ;;  %v986_v26 = vld [vmem:[#allocation6 + $0xc0] ss:$8 sps:$4 sm:$0xff]  }
  0x72   :  { %684 = vmatprep.subr.bf16.mxu0 %v981_v23 }
  0x74   :  { %334 = vmatpush1.bf16.msra.mxu1 %v945_v25  ;;  %v984_v25 = vld [vmem:[#allocation6 + $0xc4] ss:$8 sps:$4 sm:$0xff]  }
  0x75   :  { %685 = vmatpush1.bf16.msra.mxu0 %v983_v24 }
  0x76   :  { %686 = vmatprep.subr.bf16.mxu0 %v984_v25 }
  0x79   :  { %687 = vmatpush1.bf16.msra.mxu0 %v986_v26 }
  0x7a   :  { %688 = vmatprep.subr.bf16.mxu0 %v987_v27 }
  0x7d   :  { %689 = vmatpush1.bf16.msra.mxu0 %v989_v28 }
  0x7e   :  { %690 = vmatprep.subr.bf16.mxu0 %v990_v29 }
 0x12a   :  { %v177_v30 = vpop.f32.mrb[0].mxu1 }
 0x12b   :  { %v185_v31 = vrot.slane %v177_v30, 4  ;;  %v191_v32 = vmul.f32 %v177_v30, %v177_v30  ;;  %v903_v33 = vpop.f32.mrb[1].mxu1 }
 0x12c   :  { %v180_v34 = vpop.f32.mrb[2].mxu1 }
 0x12d   :  { %v186_v35 = vadd.f32 %v185_v31, %v177_v30  ;;  %v192_v36 = vrot.slane %v191_v32, 4  ;;  %v904_v37 = vpop.f32.mrb[3].mxu1  ;;  %v993_v31 = vld [vmem:[#allocation6 + $0xf4] ss:$8 sps:$4 sm:$0xff]  }
 0x12f   :  { %v187_v38 = vrot.slane %v186_v35, 2  ;;  %v193_v39 = vadd.f32 %v192_v36, %v191_v32  ;;  %v995_v32 = vld [vmem:[#allocation6 + $0xf0] ss:$8 sps:$4 sm:$0xff]  }
 0x131   :  { %v188_v40 = vadd.f32 %v187_v38, %v186_v35  ;;  %v194_v41 = vrot.slane %v193_v39, 2 }
 0x133   :  { %v189_v42 = vrot.slane %v188_v40, 1  ;;  %v195_v43 = vadd.f32 %v194_v41, %v193_v39 }
 0x135   :  { %v190_v44 = vadd.f32 %v189_v42, %v188_v40  ;;  %v196_v45 = vrot.slane %v195_v43, 1 }
 0x137   :  { %v197_v46 = vadd.f32 %v196_v45, %v195_v43  ;;  %v198_v47 = vmul.f32 0.125, %v190_v44 }
 0x139   :  { %v199_v48 = vmul.f32 0.125, %v197_v46  ;;  %v200_v49 = vmul.f32 %v198_v47, %v198_v47 }
 0x13b   :  { %v201_v50 = vsub.f32 %v199_v48, %v200_v49 }
 0x13d   :  { %v202_v51 = vadd.f32 1e-05, %v201_v50 }
 0x13f   :  { %996 = vrsqrt.f32 %v202_v51 }
 0x149   :  { %v997_v56 = vpop.eup %996 }
 0x14a   :  { %v204_v57 = vmul.f32 %v997_v56, %v183_v54 }
 0x14c   :  { %v205_v59 = vmul.f32 %v204_v57, %v198_v47  ;;  %v211_v60 = vrot.slane %v204_v57, %v1197_v55 }
 0x14e   :  { %v206_v61 = vsub.f32 %v184_v58, %v205_v59  ;;  %v213_v62 = vmul.f32 %v211_v60, %v177_v30  ;;  %v992_v30 = vld [vmem:[#allocation6 + $0xe0] ss:$8 sps:$4 sm:$0xff]  }
 0x14f   :  { %691 = vmatpush1.bf16.msra.mxu0 %v992_v30 }
 0x150   :  { %v218_v63 = vrot.slane %v206_v61, %v1197_v55  ;;  %692 = vmatprep.subr.bf16.mxu0 %v993_v31  ;;  %v361_v31 = vld [vmem:[%s1250_s6] sm:$0x3] }
 0x152   :  { %v220_v0 = vadd.f32 %v218_v63, %v213_v62 }
 0x153   :  { %693 = vmatpush1.bf16.msra.mxu0 %v995_v32 }
 0x154   :  { %v221_v1 = vmax.f32 %v220_v0, 0.0 }
 0x156   :  { %v222_v2 = vpack.c.bf16 %v221_v1, %v221_v1 }
 0x158   :  { %352 = vmatmul.mubr.bf16.vlgmr.msra.gmra.mrb[4].mxu1 %v222_v2 }
 0x22b   :  { %v353_v33 = vpop.f32.mrb[4].mxu1 }
 0x22c   :  { %v362_v34 = vrot.slane %v353_v33, 4  ;;  %v374_v35 = vmul.f32 %v353_v33, %v353_v33  ;;  %v355_v36 = vpop.f32.mrb[5].mxu1 }
 0x22d   :  { %v368_v37 = vrot.slane %v355_v36, 4  ;;  %v375_v38 = vmul.f32 %v355_v36, %v355_v36  ;;  %v357_v39 = vpop.f32.mrb[6].mxu1 }
 0x22e   :  { %v363_v40 = vadd.f32 %v362_v34, %v353_v33  ;;  %v376_v41 = vrot.slane %v374_v35, 4  ;;  %v358_v42 = vpop.f32.mrb[7].mxu1 }
 0x22f   :  { %v369_v43 = vadd.f32 %v368_v37, %v355_v36  ;;  %v382_v44 = vrot.slane %v375_v38, 4 }
 0x230   :  { %v364_v45 = vrot.slane %v363_v40, 2  ;;  %v377_v46 = vadd.f32 %v376_v41, %v374_v35 }
 0x231   :  { %v370_v47 = vrot.slane %v369_v43, 2  ;;  %v383_v48 = vadd.f32 %v382_v44, %v375_v38 }
 0x232   :  { %v365_v49 = vadd.f32 %v364_v45, %v363_v40  ;;  %v378_v50 = vrot.slane %v377_v46, 2 }
 0x233   :  { %v371_v51 = vadd.f32 %v370_v47, %v369_v43  ;;  %v384_v52 = vrot.slane %v383_v48, 2 }
 0x234   :  { %v366_v54 = vrot.slane %v365_v49, 1  ;;  %v379_v56 = vadd.f32 %v378_v50, %v377_v46 }
 0x235   :  { %v372_v57 = vrot.slane %v371_v51, 1  ;;  %v385_v58 = vadd.f32 %v384_v52, %v383_v48 }
 0x236   :  { %v367_v59 = vadd.f32 %v366_v54, %v365_v49  ;;  %v380_v60 = vrot.slane %v379_v56, 1 }
 0x237   :  { %v386_v61 = vrot.slane %v385_v58, 1  ;;  %v373_v62 = vadd.f32 %v372_v57, %v371_v51 }
 0x238   :  { %v381_v63 = vadd.f32 %v380_v60, %v379_v56  ;;  %v388_v0 = vmul.f32 0.125, %v367_v59 }
 0x239   :  { %v387_v1 = vadd.f32 %v386_v61, %v385_v58  ;;  %v389_v2 = vmul.f32 0.125, %v373_v62 }
 0x23a   :  { %v390_v3 = vmul.f32 0.125, %v381_v63  ;;  %v392_v4 = vmul.f32 %v388_v0, %v388_v0 }
 0x23b   :  { %v391_v5 = vmul.f32 0.125, %v387_v1  ;;  %v393_v6 = vmul.f32 %v389_v2, %v389_v2 }
 0x23c   :  { %v394_v7 = vsub.f32 %v390_v3, %v392_v4 }
 0x23d   :  { %v395_v8 = vsub.f32 %v391_v5, %v393_v6 }
 0x23e   :  { %v396_v9 = vadd.f32 1e-05, %v394_v7 }
 0x23f   :  { %v397_v10 = vadd.f32 1e-05, %v395_v8 }
 0x240   :  { %998 = vrsqrt.f32 %v396_v9 }
 0x241   :  { %1000 = vrsqrt.f32 %v397_v10 }
 0x24a   :  { %v999_v14 = vpop.eup %998 }
 0x24b   :  { %v1001_v16 = vpop.eup %1000 }
 0x24c   :  { %v402_v17 = vcombine.low %v999_v14, %v1001_v16 }
 0x24e   :  { %v409_v18 = vrot.slane %v402_v17, %v1205_v15 }
 0x250   :  { %v416_v20 = vrot.slane %v409_v18, %v1205_v15 }
 0x252   :  { %v418_v22 = vmul.f32 %v416_v20, %v360_v19 }
 0x254   :  { %v423_v23 = vrot.slane %v418_v22, %v1197_v55  ;;  %v427_v24 = vrot.slane %v418_v22, %v1213_v21 }
 0x256   :  { %v430_v25 = vmul.f32 %v423_v23, %v388_v0  ;;  %v431_v26 = vmul.f32 %v427_v24, %v389_v2  ;;  %v452_v27 = vmul.f32 %v427_v24, %v355_v36  ;;  %v451_v28 = vmul.f32 %v423_v23, %v353_v33 }
 0x258   :  { %v434_v29 = vcombine.low %v430_v25, %v431_v26  ;;  %v703_v25 = vld [vmem:[%s1252_s8] sm:$0x3] }
 0x25a   :  { %v441_v30 = vrot.slane %v434_v29, %v1205_v15 }
 0x25c   :  { %v448_v32 = vrot.slane %v441_v30, %v1205_v15 }
 0x25e   :  { %v450_v53 = vsub.f32 %v361_v31, %v448_v32 }
 0x260   :  { %v461_v34 = vrot.slane %v450_v53, %v1213_v21  ;;  %v457_v35 = vrot.slane %v450_v53, %v1197_v55 }
 0x262   :  { %v465_v37 = vadd.f32 %v461_v34, %v452_v27  ;;  %v464_v38 = vadd.f32 %v457_v35, %v451_v28 }
 0x264   :  { %v467_v39 = vmax.f32 %v465_v37, 0.0  ;;  %v466_v40 = vmax.f32 %v464_v38, 0.0  ;;  %v704_v37 = vld [vmem:[%s1253_s9] sm:$0x3] }
 0x266   :  { %v469_v36 = vpack.c.bf16 %v467_v39, %v467_v39  ;;  %v468_v33 = vpack.c.bf16 %v466_v40, %v466_v40 }
 0x268   :  { %694 = vmatprep.mubr.bf16.mxu0 %v469_v36 }
 0x269   :  { %695 = vmatmul.mubr.bf16.vlgmr.msra.gmra.mrb[0].mxu0 %v468_v33 }
 0x33c   :  { %v696_v41 = vpop.f32.mrb[0].mxu0 }
 0x33d   :  { %v705_v42 = vrot.slane %v696_v41, 4  ;;  %v717_v43 = vmul.f32 %v696_v41, %v696_v41  ;;  %v698_v44 = vpop.f32.mrb[1].mxu0 }
 0x33e   :  { %v711_v45 = vrot.slane %v698_v44, 4  ;;  %v718_v46 = vmul.f32 %v698_v44, %v698_v44  ;;  %v700_v47 = vpop.f32.mrb[2].mxu0 }
 0x33f   :  { %v706_v48 = vadd.f32 %v705_v42, %v696_v41  ;;  %v719_v49 = vrot.slane %v717_v43, 4  ;;  %v701_v50 = vpop.f32.mrb[3].mxu0 }
 0x340   :  { %v712_v51 = vadd.f32 %v711_v45, %v698_v44  ;;  %v725_v52 = vrot.slane %v718_v46, 4 }
 0x341   :  { %v707_v54 = vrot.slane %v706_v48, 2  ;;  %v720_v56 = vadd.f32 %v719_v49, %v717_v43 }
 0x342   :  { %v713_v57 = vrot.slane %v712_v51, 2  ;;  %v726_v58 = vadd.f32 %v725_v52, %v718_v46 }
 0x343   :  { %v708_v59 = vadd.f32 %v707_v54, %v706_v48  ;;  %v721_v60 = vrot.slane %v720_v56, 2 }
 0x344   :  { %v714_v61 = vadd.f32 %v713_v57, %v712_v51  ;;  %v727_v62 = vrot.slane %v726_v58, 2 }
 0x345   :  { %v709_v63 = vrot.slane %v708_v59, 1  ;;  %v722_v0 = vadd.f32 %v721_v60, %v720_v56 }
 0x346   :  { %v715_v1 = vrot.slane %v714_v61, 1  ;;  %v728_v2 = vadd.f32 %v727_v62, %v726_v58 }
 0x347   :  { %v710_v3 = vadd.f32 %v709_v63, %v708_v59  ;;  %v723_v4 = vrot.slane %v722_v0, 1 }
 0x348   :  { %v716_v5 = vadd.f32 %v715_v1, %v714_v61  ;;  %v729_v6 = vrot.slane %v728_v2, 1 }
 0x349   :  { %v724_v7 = vadd.f32 %v723_v4, %v722_v0  ;;  %v731_v8 = vmul.f32 0.125, %v710_v3 }
 0x34a   :  { %v730_v9 = vadd.f32 %v729_v6, %v728_v2  ;;  %v732_v10 = vmul.f32 0.125, %v716_v5 }
 0x34b   :  { %v733_v11 = vmul.f32 0.125, %v724_v7  ;;  %v735_v12 = vmul.f32 %v731_v8, %v731_v8 }
 0x34c   :  { %v734_v13 = vmul.f32 0.125, %v730_v9  ;;  %v736_v14 = vmul.f32 %v732_v10, %v732_v10 }
 0x34d   :  { %v737_v16 = vsub.f32 %v733_v11, %v735_v12 }
 0x34e   :  { %v738_v17 = vsub.f32 %v734_v13, %v736_v14 }
 0x34f   :  { %v739_v18 = vadd.f32 1e-05, %v737_v16 }
 0x350   :  { %v740_v19 = vadd.f32 1e-05, %v738_v17 }
 0x351   :  { %1002 = vrsqrt.f32 %v739_v18 }
 0x352   :  { %1004 = vrsqrt.f32 %v740_v19 }
 0x35b   :  { %v1003_v20 = vpop.eup %1002 }
 0x35c   :  { %v1005_v22 = vpop.eup %1004 }
 0x35d   :  { %v745_v23 = vcombine.low %v1003_v20, %v1005_v22 }
 0x35f   :  { %v752_v24 = vrot.slane %v745_v23, %v1205_v15 }
 0x361   :  { %v759_v26 = vrot.slane %v752_v24, %v1205_v15 }
 0x363   :  { %v761_v27 = vmul.f32 %v759_v26, %v703_v25 }
 0x365   :  { %v766_v28 = vrot.slane %v761_v27, %v1197_v55  ;;  %v770_v29 = vrot.slane %v761_v27, %v1213_v21 }
 0x367   :  { %v773_v30 = vmul.f32 %v766_v28, %v731_v8  ;;  %v774_v31 = vmul.f32 %v770_v29, %v732_v10  ;;  %v794_v32 = vmul.f32 %v766_v28, %v696_v41  ;;  %v795_v53 = vmul.f32 %v770_v29, %v698_v44 }
 0x369   :  { %v777_v34 = vcombine.low %v773_v30, %v774_v31 }
 0x36b   :  { %v784_v35 = vrot.slane %v777_v34, %v1205_v15 }
 0x36d   :  { %v791_v38 = vrot.slane %v784_v35, %v1205_v15 }
 0x36f   :  { %v793_v39 = vsub.f32 %v704_v37, %v791_v38 }
 0x371   :  { %v800_v40 = vrot.slane %v793_v39, %v1197_v55  ;;  %v804_v36 = vrot.slane %v793_v39, %v1213_v21 }
 0x373   :  { %v807_v33 = vadd.f32 %v800_v40, %v794_v32  ;;  %v808_v42 = vadd.f32 %v804_v36, %v795_v53 }
 0x375   :  { %1006 = vtanh.f32 %v807_v33 }
 0x376   :  { %1008 = vtanh.f32 %v808_v42 }
 0x37f   :  { %v1007_v41 = vpop.eup %1006 }
 0x380   :  { %v1009_v43 = vpop.eup %1008  ;;  %811 = vst [vmem:[%s1254_s10] sm:$0xff] %v1007_v41 }
 0x381   :  { %813 = vst.msk [vmem:[%s1254_s10 + $0x8] sm:$0xff] %vm812_vm1, %v1009_v43 }
 0x382   :  { %818 = vsyncpa [#allocation3], 1 }
 0x383   :  { %819 = vsyncpa [#allocation5], 1 }

</bundles_post_ra>
